<compile_context>
chip_gen: v7x
topology: tpu7x:2x2x1
jax: 0.10.0
libtpu: 0.0.40
codegen_flags: <defaults>
</compile_context>

<pallas_src>
import jax
import jax.numpy as jnp
from jax.experimental import pallas as pl
from jax.experimental.pallas import tpu as pltpu


def _round_up(x, m):
    return ((x + m - 1) // m) * m


def _mlp_kernel(x_ref,
                w1_ref, b1_ref,
                w2_ref, b2_ref,
                w3_ref, b3_ref,
                w4_ref, b4_ref,
                o_ref):
    """Fused 4-layer MLP: bf16 MXU matmuls with f32 accumulation.

    Hidden-layer bias-add + ReLU run in bf16 (less VALU / VMEM ld-st work on
    the (tm, 640) intermediate); the input cast to bf16 happens here instead
    of as a separate XLA pad/cast pass in the wrapper.
    """
    x = x_ref[...].astype(jnp.bfloat16)

    h = jnp.dot(x, w1_ref[...], preferred_element_type=jnp.float32)
    h = jnp.maximum(h.astype(jnp.bfloat16) + b1_ref[...], 0)

    h = jnp.dot(h, w2_ref[...], preferred_element_type=jnp.float32)
    h = jnp.maximum(h.astype(jnp.bfloat16) + b2_ref[...], 0)

    h = jnp.dot(h, w3_ref[...], preferred_element_type=jnp.float32)
    h = jnp.maximum(h.astype(jnp.bfloat16) + b3_ref[...], 0)

    out = jnp.dot(h, w4_ref[...], preferred_element_type=jnp.float32) + b4_ref[...]
    o_ref[...] = out.astype(o_ref.dtype)        # lane-dense bf16 store


def prepare_params(params):
    """Pad layer output dims to lane-dense multiples of 128 and cast to bf16 ONCE.

    Call this outside the rollout loop; re-padding / re-casting the weights on
    every forward would cost several HBM passes comparable to the kernel itself.
    params: w1..w4 as (in_features, out_features), b1..b4 as (1, out_features), f32.
    Zero padding is exact through ReLU (zero rows contribute nothing, zero
    columns stay zero).
    """
    in_size = params["w1"].shape[0]
    out_size = params["w4"].shape[1]
    h1 = _round_up(params["w1"].shape[1], 128)      # 520 -> 640
    h2 = _round_up(params["w2"].shape[1], 128)      # 20  -> 128
    h3 = _round_up(params["w3"].shape[1], 128)      # 20  -> 128
    outp = _round_up(out_size, 128)                 # 16  -> 128

    def pad_w(w, rows, cols):
        return jnp.pad(w, ((0, rows - w.shape[0]), (0, cols - w.shape[1])))

    def pad_b(b, cols):
        return jnp.pad(b, ((0, 0), (0, cols - b.shape[1])))

    return dict(
        in_size=in_size, out_size=out_size, out_padded=outp,
        # w1 keeps its true row count: the input feature dim is never padded
        # (full-extent block, so the (8,128) rule does not apply to it).
        w1=pad_w(params["w1"], in_size, h1).astype(jnp.bfloat16),
        w2=pad_w(params["w2"], h1, h2).astype(jnp.bfloat16),
        w3=pad_w(params["w3"], h2, h3).astype(jnp.bfloat16),
        w4=pad_w(params["w4"], h3, outp).astype(jnp.bfloat16),
        b1=pad_b(params["b1"], h1).astype(jnp.bfloat16),
        b2=pad_b(params["b2"], h2).astype(jnp.bfloat16),
        b3=pad_b(params["b3"], h3).astype(jnp.bfloat16),
        b4=pad_b(params["b4"], outp).astype(jnp.float32),
    )


def compact_policy_net_forward(states, prepared, *, max_tm=1024, min_tiles=2):
    """Pallas forward for CompactPolicyNet.

    states: (N, ...) — flattened row-major to (N, in_size), any float dtype.
    prepared: output of prepare_params().
    Returns: (N, out_size) float32.
    """
    N = states.shape[0]
    in_size = prepared["in_size"]
    out_size = prepared["out_size"]
    OUT = prepared["out_padded"]

    x = states.reshape(N, in_size)          # native dtype; bf16 cast is in-kernel

    # ---- balanced batch tiling ----------------------------------------------
    # Multiple of 16 rows (bf16 output packs 2 rows / sublane -> unmasked vst).
    # Aim for >= min_tiles grid steps so v7x can shard the parallel axis over
    # both TensorCores; cap tile rows at max_tm (amortizes per-step overhead
    # on single-TC v5e/v6e while staying far under scoped VMEM).
    SUB = 16
    n_pad = _round_up(N, SUB)
    num_tiles = max(pl.cdiv(n_pad, max_tm), min(min_tiles, n_pad // SUB))
    tm = _round_up(pl.cdiv(n_pad, num_tiles), SUB)
    Np = num_tiles * tm
    if Np != N:
        x = jnp.pad(x, ((0, Np - N), (0, 0)))

    def batch_spec(cols):
        return pl.BlockSpec((tm, cols), lambda i: (i, 0))

    def resident_spec(arr):
        # Full-array block with a constant index_map: DMA'd once, VMEM-resident.
        return pl.BlockSpec(arr.shape, lambda i: (0, 0))

    w1, b1 = prepared["w1"], prepared["b1"]
    w2, b2 = prepared["w2"], prepared["b2"]
    w3, b3 = prepared["w3"], prepared["b3"]
    w4, b4 = prepared["w4"], prepared["b4"]

    weight_bytes = sum(int(a.size) * a.dtype.itemsize
                       for a in (w1, b1, w2, b2, w3, b3, w4, b4))
    flops = 2 * Np * (in_size * w1.shape[1]
                      + w2.shape[0] * w2.shape[1]
                      + w3.shape[0] * w3.shape[1]
                      + w4.shape[0] * OUT)
    bytes_accessed = int(x.size) * x.dtype.itemsize + weight_bytes + Np * OUT * 2

    out_padded = pl.pallas_call(
        _mlp_kernel,
        out_shape=jax.ShapeDtypeStruct((Np, OUT), jnp.bfloat16),   # bf16 store
        grid_spec=pltpu.PrefetchScalarGridSpec(
            num_scalar_prefetch=0,
            grid=(num_tiles,),
            in_specs=[
                batch_spec(in_size),
                resident_spec(w1), resident_spec(b1),
                resident_spec(w2), resident_spec(b2),
                resident_spec(w3), resident_spec(b3),
                resident_spec(w4), resident_spec(b4),
            ],
            out_specs=batch_spec(OUT),
        ),
        compiler_params=pltpu.CompilerParams(
            dimension_semantics=("parallel",)),
        cost_estimate=pl.CostEstimate(
            flops=flops, transcendentals=0, bytes_accessed=bytes_accessed),
    )(x, w1, b1, w2, b2, w3, b3, w4, b4)

    # Slice away batch padding and the zero-padded output columns; up-cast to
    # f32 to preserve the module's output dtype (tiny N x out_size slab).
    return out_padded[:N, :out_size].astype(jnp.float32)


def init_params(key, in_size, out_size):
    """Deterministic synthetic init matching nn.Linear shapes (stored transposed)."""
    dims = [(in_size, 520), (520, 20), (20, 20), (20, out_size)]
    params = {}
    for idx, (fan_in, fan_out) in enumerate(dims, start=1):
        key, kw, kb = jax.random.split(key, 3)
        bound = 1.0 / jnp.sqrt(fan_in)
        params[f"w{idx}"] = jax.random.uniform(
            kw, (fan_in, fan_out), jnp.float32, -bound, bound)
        params[f"b{idx}"] = jax.random.uniform(
            kb, (1, fan_out), jnp.float32, -bound, bound)
    return params


def reference_forward(states, params):
    N = states.shape[0]
    in_size = params["w1"].shape[0]
    x = states.reshape(N, in_size).astype(jnp.float32)
    h = jax.nn.relu(x @ params["w1"] + params["b1"])
    h = jax.nn.relu(h @ params["w2"] + params["b2"])
    h = jax.nn.relu(h @ params["w3"] + params["b3"])
    return h @ params["w4"] + params["b4"]


if __name__ == "__main__":
    key = jax.random.PRNGKey(0)
    k_states, k_params = jax.random.split(key)

    # states: (N, C, H, W) = (8, 4, 4, 8) -> in_size = 4*4*8 = 128
    N, C, H, W = 8, 4, 4, 8
    in_size = C * H * W
    out_size = 16

    states = jax.random.normal(k_states, (N, C, H, W), jnp.float32)
    params = init_params(k_params, in_size, out_size)

    prepared = prepare_params(params)            # pad + bf16-cast weights ONCE
    out = compact_policy_net_forward(states, prepared)
    out = jax.block_until_ready(out)

    ref = reference_forward(states, params)
    assert out.shape == (N, out_size)
    # bf16 matmuls / epilogues with f32 accumulation -> small, bounded deviation.
    assert jnp.allclose(out, ref, atol=3e-2, rtol=3e-2), "mismatch vs reference"

    print("KERNEL_OK")
</pallas_src>

<mosaic_0001>
module attributes {stable_mosaic.version = 11 : i64} {
  func.func @_mlp_kernel(%arg0: i32, %arg1: memref<16x128xf32, #tpu.memory_space<vmem>>, %arg2: memref<128x640xbf16, #tpu.memory_space<vmem>>, %arg3: memref<1x640xbf16, #tpu.memory_space<vmem>>, %arg4: memref<640x128xbf16, #tpu.memory_space<vmem>>, %arg5: memref<1x128xbf16, #tpu.memory_space<vmem>>, %arg6: memref<128x128xbf16, #tpu.memory_space<vmem>>, %arg7: memref<1x128xbf16, #tpu.memory_space<vmem>>, %arg8: memref<128x128xbf16, #tpu.memory_space<vmem>>, %arg9: memref<1x128xf32, #tpu.memory_space<vmem>>, %arg10: memref<16x128xbf16, #tpu.memory_space<vmem>>) attributes {dimension_semantics = [#tpu.dimension_semantics<parallel>], iteration_bounds = array<i64: 1>, scalar_prefetch = 0 : i64, scratch_operands = 0 : i64, tpu.core_type = #tpu.core_type<tc>, window_params = [{transform_indices = @transform_0, window_bounds = array<i64: 16, 128>}, {pipeline_mode = #tpu.pipeline_mode<synchronous>, transform_indices = @transform_1, window_bounds = array<i64: 128, 640>}, {pipeline_mode = #tpu.pipeline_mode<synchronous>, transform_indices = @transform_2, window_bounds = array<i64: 1, 640>}, {pipeline_mode = #tpu.pipeline_mode<synchronous>, transform_indices = @transform_3, window_bounds = array<i64: 640, 128>}, {pipeline_mode = #tpu.pipeline_mode<synchronous>, transform_indices = @transform_4, window_bounds = array<i64: 1, 128>}, {pipeline_mode = #tpu.pipeline_mode<synchronous>, transform_indices = @transform_5, window_bounds = array<i64: 128, 128>}, {pipeline_mode = #tpu.pipeline_mode<synchronous>, transform_indices = @transform_6, window_bounds = array<i64: 1, 128>}, {pipeline_mode = #tpu.pipeline_mode<synchronous>, transform_indices = @transform_7, window_bounds = array<i64: 128, 128>}, {pipeline_mode = #tpu.pipeline_mode<synchronous>, transform_indices = @transform_8, window_bounds = array<i64: 1, 128>}, {transform_indices = @transform_9, window_bounds = array<i64: 16, 128>}]} {
    %c0 = arith.constant 0 : index
    %c0_0 = arith.constant 0 : index
    %0 = vector.load %arg1[%c0, %c0_0] : memref<16x128xf32, #tpu.memory_space<vmem>>, vector<16x128xf32>
    %1 = arith.truncf %0 : vector<16x128xf32> to vector<16x128xbf16>
    %c0_1 = arith.constant 0 : index
    %c0_2 = arith.constant 0 : index
    %2 = vector.load %arg2[%c0_1, %c0_2] : memref<128x640xbf16, #tpu.memory_space<vmem>>, vector<128x640xbf16>
    %cst = arith.constant dense<0.000000e+00> : vector<16x640xf32>
    %3 = tpu.matmul %1, %2, %cst {dimension_numbers = #tpu.dot_dimension_numbers<[1], [0], [0], [1], [0, 0, 1, 1], [], []>} : vector<16x128xbf16>, vector<128x640xbf16>, vector<16x640xf32> -> vector<16x640xf32>
    %4 = arith.truncf %3 : vector<16x640xf32> to vector<16x640xbf16>
    %c0_3 = arith.constant 0 : index
    %c0_4 = arith.constant 0 : index
    %5 = vector.load %arg3[%c0_3, %c0_4] : memref<1x640xbf16, #tpu.memory_space<vmem>>, vector<1x640xbf16>
    %6 = vector.broadcast %5 : vector<1x640xbf16> to vector<16x640xbf16>
    %7 = arith.addf %4, %6 : vector<16x640xbf16>
    %cst_5 = arith.constant 0.000000e+00 : bf16
    %8 = vector.broadcast %cst_5 : bf16 to vector<16x640xbf16>
    %9 = arith.maximumf %7, %8 : vector<16x640xbf16>
    %c0_6 = arith.constant 0 : index
    %c0_7 = arith.constant 0 : index
    %10 = vector.load %arg4[%c0_6, %c0_7] : memref<640x128xbf16, #tpu.memory_space<vmem>>, vector<640x128xbf16>
    %cst_8 = arith.constant dense<0.000000e+00> : vector<16x128xf32>
    %11 = tpu.matmul %9, %10, %cst_8 {dimension_numbers = #tpu.dot_dimension_numbers<[1], [0], [0], [1], [0, 0, 1, 1], [], []>} : vector<16x640xbf16>, vector<640x128xbf16>, vector<16x128xf32> -> vector<16x128xf32>
    %12 = arith.truncf %11 : vector<16x128xf32> to vector<16x128xbf16>
    %c0_9 = arith.constant 0 : index
    %c0_10 = arith.constant 0 : index
    %13 = vector.load %arg5[%c0_9, %c0_10] : memref<1x128xbf16, #tpu.memory_space<vmem>>, vector<1x128xbf16>
    %14 = vector.broadcast %13 : vector<1x128xbf16> to vector<16x128xbf16>
    %15 = arith.addf %12, %14 : vector<16x128xbf16>
    %cst_11 = arith.constant 0.000000e+00 : bf16
    %16 = vector.broadcast %cst_11 : bf16 to vector<16x128xbf16>
    %17 = arith.maximumf %15, %16 : vector<16x128xbf16>
    %c0_12 = arith.constant 0 : index
    %c0_13 = arith.constant 0 : index
    %18 = vector.load %arg6[%c0_12, %c0_13] : memref<128x128xbf16, #tpu.memory_space<vmem>>, vector<128x128xbf16>
    %cst_14 = arith.constant dense<0.000000e+00> : vector<16x128xf32>
    %19 = tpu.matmul %17, %18, %cst_14 {dimension_numbers = #tpu.dot_dimension_numbers<[1], [0], [0], [1], [0, 0, 1, 1], [], []>} : vector<16x128xbf16>, vector<128x128xbf16>, vector<16x128xf32> -> vector<16x128xf32>
    %20 = arith.truncf %19 : vector<16x128xf32> to vector<16x128xbf16>
    %c0_15 = arith.constant 0 : index
    %c0_16 = arith.constant 0 : index
    %21 = vector.load %arg7[%c0_15, %c0_16] : memref<1x128xbf16, #tpu.memory_space<vmem>>, vector<1x128xbf16>
    %22 = vector.broadcast %21 : vector<1x128xbf16> to vector<16x128xbf16>
    %23 = arith.addf %20, %22 : vector<16x128xbf16>
    %cst_17 = arith.constant 0.000000e+00 : bf16
    %24 = vector.broadcast %cst_17 : bf16 to vector<16x128xbf16>
    %25 = arith.maximumf %23, %24 : vector<16x128xbf16>
    %c0_18 = arith.constant 0 : index
    %c0_19 = arith.constant 0 : index
    %26 = vector.load %arg8[%c0_18, %c0_19] : memref<128x128xbf16, #tpu.memory_space<vmem>>, vector<128x128xbf16>
    %cst_20 = arith.constant dense<0.000000e+00> : vector<16x128xf32>
    %27 = tpu.matmul %25, %26, %cst_20 {dimension_numbers = #tpu.dot_dimension_numbers<[1], [0], [0], [1], [0, 0, 1, 1], [], []>} : vector<16x128xbf16>, vector<128x128xbf16>, vector<16x128xf32> -> vector<16x128xf32>
    %c0_21 = arith.constant 0 : index
    %c0_22 = arith.constant 0 : index
    %28 = vector.load %arg9[%c0_21, %c0_22] : memref<1x128xf32, #tpu.memory_space<vmem>>, vector<1x128xf32>
    %29 = vector.broadcast %28 : vector<1x128xf32> to vector<16x128xf32>
    %30 = arith.addf %27, %29 : vector<16x128xf32>
    %31 = arith.truncf %30 : vector<16x128xf32> to vector<16x128xbf16>
    %c0_23 = arith.constant 0 : index
    %c0_24 = arith.constant 0 : index
    %32 = vector.load %arg10[%c0_23, %c0_24] : memref<16x128xbf16, #tpu.memory_space<vmem>>, vector<16x128xbf16>
    tpu.vector_store %arg10[%c0_23, %c0_24], %31 {strides = array<i32>} : memref<16x128xbf16, #tpu.memory_space<vmem>>, vector<16x128xbf16>,
    return
  }
  func.func @transform_0(%arg0: i32) -> (i32, i32) {
    %c0_i32 = arith.constant 0 : i32
    %c0_i32_0 = arith.constant 0 : i32
    return %arg0, %c0_i32 : i32, i32
  }
  func.func @transform_1(%arg0: i32) -> (i32, i32) {
    %c0_i32 = arith.constant 0 : i32
    %c0_i32_0 = arith.constant 0 : i32
    %c0_i32_1 = arith.constant 0 : i32
    return %c0_i32, %c0_i32_0 : i32, i32
  }
  func.func @transform_2(%arg0: i32) -> (i32, i32) {
    %c0_i32 = arith.constant 0 : i32
    %c0_i32_0 = arith.constant 0 : i32
    %c0_i32_1 = arith.constant 0 : i32
    return %c0_i32, %c0_i32_0 : i32, i32
  }
  func.func @transform_3(%arg0: i32) -> (i32, i32) {
    %c0_i32 = arith.constant 0 : i32
    %c0_i32_0 = arith.constant 0 : i32
    %c0_i32_1 = arith.constant 0 : i32
    return %c0_i32, %c0_i32_0 : i32, i32
  }
  func.func @transform_4(%arg0: i32) -> (i32, i32) {
    %c0_i32 = arith.constant 0 : i32
    %c0_i32_0 = arith.constant 0 : i32
    %c0_i32_1 = arith.constant 0 : i32
    return %c0_i32, %c0_i32_0 : i32, i32
  }
  func.func @transform_5(%arg0: i32) -> (i32, i32) {
    %c0_i32 = arith.constant 0 : i32
    %c0_i32_0 = arith.constant 0 : i32
    %c0_i32_1 = arith.constant 0 : i32
    return %c0_i32, %c0_i32_0 : i32, i32
  }
  func.func @transform_6(%arg0: i32) -> (i32, i32) {
    %c0_i32 = arith.constant 0 : i32
    %c0_i32_0 = arith.constant 0 : i32
    %c0_i32_1 = arith.constant 0 : i32
    return %c0_i32, %c0_i32_0 : i32, i32
  }
  func.func @transform_7(%arg0: i32) -> (i32, i32) {
    %c0_i32 = arith.constant 0 : i32
    %c0_i32_0 = arith.constant 0 : i32
    %c0_i32_1 = arith.constant 0 : i32
    return %c0_i32, %c0_i32_0 : i32, i32
  }
  func.func @transform_8(%arg0: i32) -> (i32, i32) {
    %c0_i32 = arith.constant 0 : i32
    %c0_i32_0 = arith.constant 0 : i32
    %c0_i32_1 = arith.constant 0 : i32
    return %c0_i32, %c0_i32_0 : i32, i32
  }
  func.func @transform_9(%arg0: i32) -> (i32, i32) {
    %c0_i32 = arith.constant 0 : i32
    %c0_i32_0 = arith.constant 0 : i32
    return %arg0, %c0_i32 : i32, i32
  }
}

</mosaic_0001>

<bundles_post_ra>
// kernel: tpu_custom_call.1
= control target key start
LH: loop header
LB: loop body
LE: loop exit
PB: predicated region body
PF: predicated region fallthrough
CT: control target
= control target key end

     0   :  { %14 = vsyncpa [#allocation3], 0  ;;  %s2045_s0 = inlined_call_operand.hbm [shape: f32[16,128], index: 0, kind: input, shape index: {}]   ;;  %s2046_s1 = inlined_call_operand.hbm [shape: bf16[128,640], index: 1, kind: input, shape index: {}]   ;;  %s2047_s2 = inlined_call_operand.vmem [shape: bf16[1,640], index: 2, kind: input, shape index: {}]   ;;  %s2048_s3 = inlined_call_operand.hbm [shape: bf16[640,128], index: 3, kind: input, shape index: {}]   ;;  %s2049_s4 = inlined_call_operand.vmem [shape: bf16[1,128], index: 4, kind: input, shape index: {}]   ;;  %s2050_s5 = inlined_call_operand.hbm [shape: bf16[128,128], index: 5, kind: input, shape index: {}]   ;;  %s2051_s6 = inlined_call_operand.vmem [shape: bf16[1,128], index: 6, kind: input, shape index: {}]   ;;  %s2052_s7 = inlined_call_operand.hbm [shape: bf16[128,128], index: 7, kind: input, shape index: {}]   ;;  %s2053_s8 = inlined_call_operand.vmem [shape: f32[1,128], index: 8, kind: input, shape index: {}]   ;;  %s2054_s9 = inlined_call_operand.hbm [shape: bf16[16,128], index: 9, kind: output, shape index: {}]  }
   0x1   :  { %15 = vsyncpa [#allocation6], 0 }
   0x2   :  { %16 = vsyncpa [#allocation9], 0 }
   0x3   :  { %17 = vsyncpa [#allocation4], 0  ;;  %s1825_s30 = smov [#allocation5]   ;;  %s1685_s13 = scalar_lea.hbm %s2046_s1, 5120 }
   0x4   :  { %s35_s10 = sshll.u32 %s1825_s30, 4  ;;  %p1686_p0 = scmp.ne.s32.totalorder %s2046_s1, %s1685_s13  ;;  %s36_s10 = int_to_ptr.vmem [resolvable:$true] %s35_s10 }
   0x5   :  { %p1689_p1 = scmp.lt.u32.totalorder %s1685_s13, %s2046_s1 }
   0x7   :  { %p1691_p2 = pnand %p1689_p1, %p1686_p0 }
   0x9   :  { %1694 = shalt.err (!%p1691_p2)
}
   0xa   :  { %s1695_s18 = scalar_lea.vmem %s36_s10, 5120  ;;  %p1700_p4 = scmp.lt.s32.totalorder %s36_s10, %s36_s10 }
   0xb   :  { %p1696_p3 = scmp.ne.s32.totalorder %s36_s10, %s1695_s18  ;;  %p1701_p5 = scmp.lt.s32.totalorder %s1695_s18, %s1695_s18 }
   0xd   :  { %p1702_p6 = por %p1701_p5, %p1700_p4 }
   0xf   :  { %p1703_p7 = pnand %p1702_p6, %p1696_p3 }
  0x11   :  { %1706 = shalt.err (!%p1703_p7)
}
  0x12   :  { %s1826_s19 = smov 320   ;;  %s1827_s20 = smov 20  }
  0x13   :  { %41 = dma.hbm_to_vmem [thread:$0]  %s2046_s1, 5120, %s36_s10, [#allocation6], %s1826_s19, %s1826_s19, %s1827_s20  }
  0x14   :  { %s1828_s23 = smov [#allocation8]   ;;  %s1829_s25 = smov [#allocation2]  }
  0x15   :  { %s63_s24 = sshll.u32 %s1828_s23, 4  ;;  %s23_s26 = sshll.u32 %s1829_s25, 4  ;;  %s64_s24 = int_to_ptr.vmem [resolvable:$true] %s63_s24  ;;  %s24_s26 = int_to_ptr.vmem [resolvable:$true] %s23_s26 }
  0x16   :  { %s1707_s29 = scalar_lea.hbm %s2050_s5, 1024 }
  0x17   :  { %p1708_p8 = scmp.ne.s32.totalorder %s2050_s5, %s1707_s29  ;;  %p1711_p9 = scmp.lt.u32.totalorder %s1707_s29, %s2050_s5 }
  0x19   :  { %p1713_p10 = pnand %p1711_p9, %p1708_p8 }
  0x1b   :  { %1716 = shalt.err (!%p1713_p10)
}
  0x1c   :  { %s1717_s1 = scalar_lea.vmem %s64_s24, 1024  ;;  %p1722_p12 = scmp.lt.s32.totalorder %s64_s24, %s64_s24 }
  0x1d   :  { %p1718_p11 = scmp.ne.s32.totalorder %s64_s24, %s1717_s1  ;;  %p1723_p13 = scmp.lt.s32.totalorder %s1717_s1, %s1717_s1 }
  0x1f   :  { %p1724_p0 = por %p1723_p13, %p1722_p12 }
  0x21   :  { %p1725_p1 = pnand %p1724_p0, %p1718_p11 }
  0x23   :  { %1728 = shalt.err (!%p1725_p1)
}
  0x24   :  { %s1830_s10 = smov 64   ;;  %s1831_s14 = smov 4  }
  0x25   :  { %69 = dma.hbm_to_vmem [thread:$0]  %s2050_s5, 1024, %s64_s24, [#allocation9], %s1830_s10, %s1830_s10, %s1831_s14  }
  0x26   :  { %s1729_s19 = scalar_lea.hbm %s2045_s0, 256 }
  0x27   :  { %p1730_p2 = scmp.ne.s32.totalorder %s2045_s0, %s1729_s19  ;;  %p1733_p3 = scmp.lt.u32.totalorder %s1729_s19, %s2045_s0 }
  0x29   :  { %p1735_p4 = pnand %p1733_p3, %p1730_p2 }
  0x2b   :  { %1738 = shalt.err (!%p1735_p4)
}
  0x2c   :  { %s1739_s25 = scalar_lea.vmem %s24_s26, 256  ;;  %p1744_p6 = scmp.lt.s32.totalorder %s24_s26, %s24_s26 }
  0x2d   :  { %p1740_p5 = scmp.ne.s32.totalorder %s24_s26, %s1739_s25  ;;  %p1745_p7 = scmp.lt.s32.totalorder %s1739_s25, %s1739_s25 }
  0x2f   :  { %p1746_p8 = por %p1745_p7, %p1744_p6 }
  0x31   :  { %p1747_p9 = pnand %p1746_p8, %p1740_p5 }
  0x33   :  { %1750 = shalt.err (!%p1747_p9)
}
  0x34   :  { %s1832_s5 = smov 128   ;;  %s1833_s24 = smov 8  }
  0x35   :  { %29 = dma.hbm_to_vmem [thread:$0]  %s2045_s0, 256, %s24_s26, [#allocation3], %s1832_s5, %s1832_s5, %s1833_s24  }
  0x36   :  { %s1834_s29 = smov [#allocation7]   ;;  %s1835_s11 = smov [#allocation10]  }
  0x37   :  { %s49_s30 = sshll.u32 %s1834_s29, 4  ;;  %s77_s12 = sshll.u32 %s1835_s11, 4  ;;  %s50_s30 = int_to_ptr.vmem [resolvable:$true] %s49_s30  ;;  %s78_s12 = int_to_ptr.vmem [resolvable:$true] %s77_s12 }
  0x38   :  { %s1751_s15 = scalar_lea.hbm %s2048_s3, 5120 }
  0x39   :  { %p1752_p10 = scmp.ne.s32.totalorder %s2048_s3, %s1751_s15  ;;  %p1755_p11 = scmp.lt.u32.totalorder %s1751_s15, %s2048_s3 }
  0x3b   :  { %p1757_p12 = pnand %p1755_p11, %p1752_p10 }
  0x3d   :  { %1760 = shalt.err (!%p1757_p12)
}
  0x3e   :  { %s1761_s0 = scalar_lea.vmem %s50_s30, 5120  ;;  %p1766_p0 = scmp.lt.s32.totalorder %s50_s30, %s50_s30 }
  0x3f   :  { %p1762_p13 = scmp.ne.s32.totalorder %s50_s30, %s1761_s0  ;;  %p1767_p1 = scmp.lt.s32.totalorder %s1761_s0, %s1761_s0 }
  0x41   :  { %p1768_p2 = por %p1767_p1, %p1766_p0 }
  0x43   :  { %p1769_p3 = pnand %p1768_p2, %p1762_p13 }
  0x45   :  { %1772 = shalt.err (!%p1769_p3)
}
  0x46   :  { %55 = dma.hbm_to_vmem [thread:$0]  %s2048_s3, 5120, %s50_s30, [#allocation6], %s1830_s10, %s1830_s10, %s1831_s14  }
  0x47   :  { %s1773_s23 = scalar_lea.hbm %s2052_s7, 1024 }
  0x48   :  { %p1774_p4 = scmp.ne.s32.totalorder %s2052_s7, %s1773_s23  ;;  %p1777_p5 = scmp.lt.u32.totalorder %s1773_s23, %s2052_s7 }
  0x4a   :  { %p1779_p6 = pnand %p1777_p5, %p1774_p4 }
  0x4c   :  { %1782 = shalt.err (!%p1779_p6)
}
  0x4d   :  { %s1783_s28 = scalar_lea.vmem %s78_s12, 1024  ;;  %p1788_p8 = scmp.lt.s32.totalorder %s78_s12, %s78_s12 }
  0x4e   :  { %p1784_p7 = scmp.ne.s32.totalorder %s78_s12, %s1783_s28  ;;  %p1789_p9 = scmp.lt.s32.totalorder %s1783_s28, %s1783_s28 }
  0x50   :  { %p1790_p10 = por %p1789_p9, %p1788_p8 }
  0x52   :  { %p1791_p11 = pnand %p1790_p10, %p1784_p7 }
  0x54   :  { %1794 = shalt.err (!%p1791_p11)
}
  0x55   :  { %83 = dma.hbm_to_vmem [thread:$0]  %s2052_s7, 1024, %s78_s12, [#allocation9], %s1830_s10, %s1830_s10, %s1831_s14  }
  0x56   :  { %1817 = dma.done.wait [#allocation3], 256  }
  0x57   :  { %1818 = vsyncadd [#allocation3], 4294967040 }
  0x58   :  { %1819 = dma.done.wait [#allocation6], 10240  }
  0x59   :  { %1820 = vsyncadd [#allocation6], 4294957056 }
  0x5a   :  { %1821 = dma.done.wait [#allocation9], 2048  }
  0x5b   :  { %1822 = vsyncadd [#allocation9], 4294965248  ;;  %v1836_v0 = vmov 0   ;;  %v1572_v1 = vld [vmem:[#allocation5 + $0x4] ss:$20 sps:$4 sm:$0xff]   ;;  %v102_v33 = vld [vmem:[#allocation2] sm:$0xff] }
  0x5c   :  { %393 = vmatprep.mubr.bf16.mxu0 %v1836_v0  ;;  %436 = vmatprep.mubr.bf16.mxu1 %v1836_v0  ;;  %v1574_v2 = vld [vmem:[#allocation5 + $0xc] ss:$20 sps:$4 sm:$0xff]   ;;  %v1577_v4 = vld [vmem:[#allocation5 + $0x8] ss:$20 sps:$4 sm:$0xff]   ;;  %v1583_v8 = vld [vmem:[#allocation5 + $0x30] ss:$20 sps:$4 sm:$0xff]  }
  0x5d   :  { %361 = vmatprep.subr.bf16.mxu0 %v1572_v1  ;;  %v1576_v3 = vld [vmem:[#allocation5] ss:$20 sps:$4 sm:$0xff]   ;;  %404 = vmatprep.subr.bf16.mxu1 %v1574_v2  ;;  %v1582_v7 = vld [vmem:[#allocation5 + $0x28] ss:$20 sps:$4 sm:$0xff]   ;;  %v1588_v11 = vld [vmem:[#allocation5 + $0x50] ss:$20 sps:$4 sm:$0xff]  }
  0x5e   :  { %v1578_v5 = vld [vmem:[#allocation5 + $0x2c] ss:$20 sps:$4 sm:$0xff]   ;;  %362 = vmatpush1.bf16.msra.mxu0 %v1576_v3  ;;  %405 = vmatpush1.bf16.msra.mxu1 %v1577_v4  ;;  %v1580_v6 = vld [vmem:[#allocation5 + $0x34] ss:$20 sps:$4 sm:$0xff]   ;;  %v1586_v10 = vld [vmem:[#allocation5 + $0x5c] ss:$20 sps:$4 sm:$0xff]  }
  0x5f   :  { %363 = vmatprep.subr.bf16.mxu0 %v1578_v5  ;;  %406 = vmatprep.subr.bf16.mxu1 %v1580_v6  ;;  %v1584_v9 = vld [vmem:[#allocation5 + $0x54] ss:$20 sps:$4 sm:$0xff]   ;;  %v1589_v12 = vld [vmem:[#allocation5 + $0x58] ss:$20 sps:$4 sm:$0xff]   ;;  %v1590_v13 = vld [vmem:[#allocation5 + $0x7c] ss:$20 sps:$4 sm:$0xff]  }
  0x60   :  { %v1592_v14 = vld [vmem:[#allocation5 + $0x84] ss:$20 sps:$4 sm:$0xff]   ;;  %v1595_v16 = vld [vmem:[#allocation5 + $0x80] ss:$20 sps:$4 sm:$0xff]   ;;  %v1601_v20 = vld [vmem:[#allocation5 + $0xa8] ss:$20 sps:$4 sm:$0xff]  }
  0x61   :  { %v1594_v15 = vld [vmem:[#allocation5 + $0x78] ss:$20 sps:$4 sm:$0xff]   ;;  %v1600_v19 = vld [vmem:[#allocation5 + $0xa0] ss:$20 sps:$4 sm:$0xff]   ;;  %v1606_v23 = vld [vmem:[#allocation5 + $0xc8] ss:$20 sps:$4 sm:$0xff]  }
  0x62   :  { %364 = vmatpush1.bf16.msra.mxu0 %v1582_v7  ;;  %407 = vmatpush1.bf16.msra.mxu1 %v1583_v8  ;;  %v1596_v17 = vld [vmem:[#allocation5 + $0xa4] ss:$20 sps:$4 sm:$0xff]   ;;  %v1598_v18 = vld [vmem:[#allocation5 + $0xac] ss:$20 sps:$4 sm:$0xff]   ;;  %v1604_v22 = vld [vmem:[#allocation5 + $0xd4] ss:$20 sps:$4 sm:$0xff]  }
  0x63   :  { %365 = vmatprep.subr.bf16.mxu0 %v1584_v9  ;;  %408 = vmatprep.subr.bf16.mxu1 %v1586_v10  ;;  %v1602_v21 = vld [vmem:[#allocation5 + $0xcc] ss:$20 sps:$4 sm:$0xff]   ;;  %v1607_v24 = vld [vmem:[#allocation5 + $0xd0] ss:$20 sps:$4 sm:$0xff]   ;;  %v1608_v25 = vld [vmem:[#allocation5 + $0xf4] ss:$20 sps:$4 sm:$0xff]  }
  0x64   :  { %v1610_v26 = vld [vmem:[#allocation5 + $0xfc] ss:$20 sps:$4 sm:$0xff]   ;;  %v1613_v28 = vld [vmem:[#allocation5 + $0xf8] ss:$20 sps:$4 sm:$0xff]   ;;  %v1619_v32 = vld [vmem:[#allocation5 + $0x120] ss:$20 sps:$4 sm:$0xff]  }
  0x65   :  { %v1612_v27 = vld [vmem:[#allocation5 + $0xf0] ss:$20 sps:$4 sm:$0xff]   ;;  %v1618_v31 = vld [vmem:[#allocation5 + $0x118] ss:$20 sps:$4 sm:$0xff]   ;;  %v1837_v38 = vmov 0.0   ;;  %vm1838_vm0 = vmmov 0  }
  0x66   :  { %366 = vmatpush1.bf16.msra.mxu0 %v1588_v11  ;;  %409 = vmatpush1.bf16.msra.mxu1 %v1589_v12  ;;  %v1614_v29 = vld [vmem:[#allocation5 + $0x11c] ss:$20 sps:$4 sm:$0xff]   ;;  %v1616_v30 = vld [vmem:[#allocation5 + $0x124] ss:$20 sps:$4 sm:$0xff]   ;;  %v1632_v40 = vld [vmem:[#allocation7 + $0x48] sm:$0xff]  }
  0x67   :  { %367 = vmatprep.subr.bf16.mxu0 %v1590_v13  ;;  %410 = vmatprep.subr.bf16.mxu1 %v1592_v14  ;;  %v103_v34 = vld [vmem:[#allocation2 + $0x8] sm:$0xff]  ;;  %v1628_v35 = vld [vmem:[#allocation7 + $0x40] sm:$0xff]   ;;  %v1633_v42 = vld [vmem:[#allocation7 + $0x8] sm:$0xff]   ;;  %v1839_v14 = vmov 1966171168  }
  0x68   :  { %v104_v36 = vpack.c.bf16 %v103_v34, %v102_v33  ;;  %v1620_v37 = vld [vmem:[#allocation5 + $0x10] ss:$20 sps:$4 sm:$0xff]   ;;  %v1621_v41 = vld [vmem:[#allocation5 + $0x38] ss:$20 sps:$4 sm:$0xff]   ;;  %v1622_v44 = vld [vmem:[#allocation5 + $0x60] ss:$20 sps:$4 sm:$0xff]  }
  0x69   :  { %v1629_v39 = vld [vmem:[#allocation7] sm:$0xff]   ;;  %v1636_v43 = vld [vmem:[#allocation7 + $0x50] sm:$0xff]   ;;  %v1640_v46 = vld [vmem:[#allocation7 + $0x58] sm:$0xff]  }
  0x6a   :  { %368 = vmatpush1.bf16.msra.mxu0 %v1594_v15  ;;  %411 = vmatpush1.bf16.msra.mxu1 %v1595_v16  ;;  %v1637_v45 = vld [vmem:[#allocation7 + $0x10] sm:$0xff]   ;;  %v1623_v47 = vld [vmem:[#allocation5 + $0x88] ss:$20 sps:$4 sm:$0xff]   ;;  %v1644_v49 = vld [vmem:[#allocation7 + $0x60] sm:$0xff]   ;;  %v497_v15 = vunpack.c.l.s4 %v1839_v14  ;;  %v499_v16 = vlaneseq }
  0x6b   :  { %369 = vmatprep.subr.bf16.mxu0 %v1596_v17  ;;  %412 = vmatprep.subr.bf16.mxu1 %v1598_v18  ;;  %v1641_v48 = vld [vmem:[#allocation7 + $0x18] sm:$0xff]   ;;  %v1624_v50 = vld [vmem:[#allocation5 + $0xb0] ss:$20 sps:$4 sm:$0xff]   ;;  %v1648_v52 = vld [vmem:[#allocation7 + $0x68] sm:$0xff]  }
  0x6c   :  { %v1645_v51 = vld [vmem:[#allocation7 + $0x20] sm:$0xff]   ;;  %v1625_v53 = vld [vmem:[#allocation5 + $0xd8] ss:$20 sps:$4 sm:$0xff]   ;;  %v1627_v56 = vld [vmem:[#allocation5 + $0x128] ss:$20 sps:$4 sm:$0xff]   ;;  %v498_v17 = vunpack.c.0.s8 %v497_v15  ;;  %v500_v18 = vshrl.u32 %v499_v16, 7 }
  0x6d   :  { %v1649_v54 = vld [vmem:[#allocation7 + $0x28] sm:$0xff]   ;;  %v1626_v55 = vld [vmem:[#allocation5 + $0x100] ss:$20 sps:$4 sm:$0xff]   ;;  %v1642_v63 = vld [vmem:[#allocation7 + $0xd8] sm:$0xff]  }
  0x6e   :  { %370 = vmatpush1.bf16.msra.mxu0 %v1600_v19  ;;  %413 = vmatpush1.bf16.msra.mxu1 %v1601_v20  ;;  %v1630_v57 = vld [vmem:[#allocation7 + $0xc0] sm:$0xff]   ;;  %v1634_v59 = vld [vmem:[#allocation7 + $0xc8] sm:$0xff]   ;;  %v1638_v61 = vld [vmem:[#allocation7 + $0xd0] sm:$0xff]   ;;  %v501_v19 = vsub.s32 %v498_v17, %v500_v18 }
  0x6f   :  { %371 = vmatprep.subr.bf16.mxu0 %v1602_v21  ;;  %414 = vmatprep.subr.bf16.mxu1 %v1604_v22  ;;  %v1631_v58 = vld [vmem:[#allocation7 + $0x80] sm:$0xff]   ;;  %v1635_v60 = vld [vmem:[#allocation7 + $0x88] sm:$0xff]   ;;  %v1639_v62 = vld [vmem:[#allocation7 + $0x90] sm:$0xff]  }
  0x70   :  { %v1643_v1 = vld [vmem:[#allocation7 + $0x98] sm:$0xff]   ;;  %v1646_v2 = vld [vmem:[#allocation7 + $0xe0] sm:$0xff]   ;;  %v1650_v4 = vld [vmem:[#allocation7 + $0xe8] sm:$0xff]  }
  0x71   :  { %v1647_v3 = vld [vmem:[#allocation7 + $0xa0] sm:$0xff]   ;;  %v1651_v5 = vld [vmem:[#allocation7 + $0xa8] sm:$0xff]   ;;  %v1652_v6 = vld [vmem:[#allocation7 + $0x70] sm:$0xff]  }
  0x72   :  { %372 = vmatpush1.bf16.msra.mxu0 %v1606_v23  ;;  %415 = vmatpush1.bf16.msra.mxu1 %v1607_v24  ;;  %v1653_v7 = vld [vmem:[#allocation7 + $0x30] sm:$0xff]   ;;  %v1656_v10 = vld [vmem:[#allocation7 + $0x78] sm:$0xff]   ;;  %v1669_v14 = vld [vmem:[#allocation8] sm:$0xff]  }
  0x73   :  { %373 = vmatprep.subr.bf16.mxu0 %v1608_v25  ;;  %416 = vmatprep.subr.bf16.mxu1 %v1610_v26  ;;  %v1654_v8 = vld [vmem:[#allocation7 + $0xf0] sm:$0xff]   ;;  %v1657_v11 = vld [vmem:[#allocation7 + $0x38] sm:$0xff]   ;;  %v1670_v15 = vld [vmem:[#allocation8 + $0x8] sm:$0xff]  }
  0x74   :  { %v1655_v9 = vld [vmem:[#allocation7 + $0xb0] sm:$0xff]   ;;  %v1658_v12 = vld [vmem:[#allocation7 + $0xf8] sm:$0xff]  }
  0x75   :  { %v1659_v13 = vld [vmem:[#allocation7 + $0xb8] sm:$0xff]   ;;  %v493_v20 = vld [vmem:[%s2047_s2] sm:$0x1f] }
  0x76   :  { %374 = vmatpush1.bf16.msra.mxu0 %v1612_v27  ;;  %417 = vmatpush1.bf16.msra.mxu1 %v1613_v28  ;;  %v502_v21 = vrot.slane %v493_v20, %v501_v19  ;;  %v1977_v28 = vsub.s32 0, %v500_v18  ;;  %v1671_v16 = vld [vmem:[#allocation8 + $0x10] sm:$0xff]   ;;  %v1672_v17 = vld [vmem:[#allocation8 + $0x18] sm:$0xff]   ;;  %v1673_v18 = vld [vmem:[#allocation8 + $0x20] sm:$0xff]  }
  0x77   :  { %375 = vmatprep.subr.bf16.mxu0 %v1614_v29  ;;  %418 = vmatprep.subr.bf16.mxu1 %v1616_v30 }
  0x78   :  { %v510_v22 = vcombine.high %v502_v21, %v502_v21  ;;  %v517_v23 = vrot.slane %v502_v21, %v501_v19  ;;  %v1676_v21 = vld [vmem:[#allocation8 + $0x38] sm:$0xff]  }
  0x7a   :  { %376 = vmatpush1.bf16.msra.mxu0 %v1618_v31  ;;  %419 = vmatpush1.bf16.msra.mxu1 %v1619_v32  ;;  %v531_v24 = vrot.slane %v510_v22, %v501_v19  ;;  %v532_v25 = vcombine.high %v517_v23, %v517_v23  ;;  %v535_v27 = vpack.i.b16 %v517_v23, %v517_v23  ;;  %v1677_v22 = vld [vmem:[#allocation10] sm:$0xff]   ;;  %v1678_v23 = vld [vmem:[#allocation10 + $0x8] sm:$0xff]  }
  0x7b   :  { %1476 = vmatprep.subr.bf16.mxu0 %v1837_v38  ;;  %1405 = vmatprep.subr.bf16.mxu1 %v1628_v35 }
  0x7c   :  { %v533_v26 = vcombine.high %v531_v24, %v531_v24  ;;  %v549_v29 = vpack.i.b16 %v532_v25, %v532_v25  ;;  %v542_v30 = vpack.i.b16 %v531_v24, %v531_v24  ;;  %v1679_v24 = vld [vmem:[#allocation10 + $0x10] sm:$0xff]   ;;  %v1680_v25 = vld [vmem:[#allocation10 + $0x18] sm:$0xff]  }
  0x7d   :  { %394 = vmatmul.mubr.bf16.vlgmr.msra.gmra.mrb[0].mxu0 %v104_v36  ;;  %437 = vmatmul.mubr.bf16.vlgmr.msra.gmra.mrb[0].mxu1 %v104_v36 }
  0x7e   :  { %1477 = vmatpush3.bf16.msra.mxu0 %v1620_v37  ;;  %1492 = vmatprep.mubr.msk.bf16.mxu0 %vm1838_vm0, %v1837_v38  ;;  %v556_v31 = vpack.i.b16 %v533_v26, %v533_v26  ;;  %v554_v37 = vrot.slane %v549_v29, %v1977_v28  ;;  %v1681_v26 = vld [vmem:[#allocation10 + $0x20] sm:$0xff]  }
  0x7f   :  { %1478 = vmatprep.subr.bf16.mxu0 %v1837_v38  ;;  %1406 = vmatpush3.bf16.msra.mxu1 %v1629_v39 }
  0x80   :  { %1407 = vmatprep.subr.bf16.mxu1 %v1632_v40 }
  0x82   :  { %1479 = vmatpush3.bf16.msra.mxu0 %v1621_v41  ;;  %v547_v41 = vrot.slane %v542_v30, %v1977_v28 }
  0x83   :  { %1480 = vmatprep.subr.bf16.mxu0 %v1837_v38  ;;  %1408 = vmatpush3.bf16.msra.mxu1 %v1633_v42  ;;  %v561_v42 = vrot.slane %v556_v31, %v1977_v28 }
  0x84   :  { %1409 = vmatprep.subr.bf16.mxu1 %v1636_v43 }
  0x86   :  { %1481 = vmatpush3.bf16.msra.mxu0 %v1622_v44 }
  0x87   :  { %1482 = vmatprep.subr.bf16.mxu0 %v1837_v38  ;;  %1410 = vmatpush3.bf16.msra.mxu1 %v1637_v45 }
  0x88   :  { %1411 = vmatprep.subr.bf16.mxu1 %v1640_v46 }
  0x8a   :  { %1483 = vmatpush3.bf16.msra.mxu0 %v1623_v47 }
  0x8b   :  { %1484 = vmatprep.subr.bf16.mxu0 %v1837_v38  ;;  %1412 = vmatpush3.bf16.msra.mxu1 %v1641_v48 }
  0x8c   :  { %1413 = vmatprep.subr.bf16.mxu1 %v1644_v49 }
  0x8e   :  { %1485 = vmatpush3.bf16.msra.mxu0 %v1624_v50 }
  0x8f   :  { %1486 = vmatprep.subr.bf16.mxu0 %v1837_v38  ;;  %1414 = vmatpush3.bf16.msra.mxu1 %v1645_v51 }
  0x90   :  { %1415 = vmatprep.subr.bf16.mxu1 %v1648_v52 }
  0x92   :  { %1487 = vmatpush3.bf16.msra.mxu0 %v1625_v53 }
  0x93   :  { %1488 = vmatprep.subr.bf16.mxu0 %v1837_v38  ;;  %1416 = vmatpush3.bf16.msra.mxu1 %v1649_v54 }
  0x94   :  { %1417 = vmatprep.subr.bf16.mxu1 %v1652_v6 }
  0x96   :  { %1489 = vmatpush3.bf16.msra.mxu0 %v1626_v55 }
  0x97   :  { %1490 = vmatprep.subr.bf16.mxu0 %v1837_v38  ;;  %1418 = vmatpush3.bf16.msra.mxu1 %v1653_v7 }
  0x98   :  { %1419 = vmatprep.subr.bf16.mxu1 %v1656_v10 }
  0x9a   :  { %1491 = vmatpush3.bf16.msra.mxu0 %v1627_v56  ;;  %v1660_v56 = vld [vmem:[#allocation7 + $0x100] sm:$0xff]  }
  0x9b   :  { %1427 = vmatprep.subr.bf16.mxu0 %v1630_v57  ;;  %1420 = vmatpush3.bf16.msra.mxu1 %v1657_v11  ;;  %v1668_v11 = vld [vmem:[#allocation7 + $0x138] sm:$0xff]  }
  0x9c   :  { %1496 = vmatprep.subr.bf16.mxu1 %v1837_v38 }
  0x9d   :  { %1493 = vmatmul.mubr.bf16.vlgmr.msra.gmra.mrb[4].mxu0 %v104_v36  ;;  %v540_v36 = vrot.slane %v535_v27, %v1977_v28  ;;  %v1682_v27 = vld [vmem:[#allocation10 + $0x28] sm:$0xff]  }
  0x9e   :  { %1428 = vmatpush3.bf16.msra.mxu0 %v1631_v58  ;;  %v1661_v58 = vld [vmem:[#allocation7 + $0x108] sm:$0xff]  }
  0x9f   :  { %1429 = vmatprep.subr.bf16.mxu0 %v1634_v59  ;;  %v1662_v59 = vld [vmem:[#allocation7 + $0x110] sm:$0xff]  }
  0xa2   :  { %1430 = vmatpush3.bf16.msra.mxu0 %v1635_v60  ;;  %v495_v60 = vcombine.high %v493_v20, %v493_v20  ;;  %v1675_v20 = vld [vmem:[#allocation8 + $0x30] sm:$0xff]  }
  0xa3   :  { %1431 = vmatprep.subr.bf16.mxu0 %v1638_v61  ;;  %v1663_v61 = vld [vmem:[#allocation7 + $0x118] sm:$0xff]  }
  0xa6   :  { %1432 = vmatpush3.bf16.msra.mxu0 %v1639_v62  ;;  %v509_v62 = vrot.slane %v495_v60, %v501_v19 }
  0xa7   :  { %1433 = vmatprep.subr.bf16.mxu0 %v1642_v63  ;;  %v1664_v63 = vld [vmem:[#allocation7 + $0x120] sm:$0xff]  }
  0xaa   :  { %1434 = vmatpush3.bf16.msra.mxu0 %v1643_v1  ;;  %v524_v1 = vrot.slane %v509_v62, %v501_v19  ;;  %v1674_v19 = vld [vmem:[#allocation8 + $0x28] sm:$0xff]  }
  0xab   :  { %1435 = vmatprep.subr.bf16.mxu0 %v1646_v2  ;;  %v1665_v2 = vld [vmem:[#allocation7 + $0x128] sm:$0xff]  }
  0xae   :  { %1436 = vmatpush3.bf16.msra.mxu0 %v1647_v3  ;;  %v563_v3 = vpack.i.b16 %v524_v1, %v524_v1 }
  0xaf   :  { %1437 = vmatprep.subr.bf16.mxu0 %v1650_v4 }
  0xb0   :  { %v568_v7 = vrot.slane %v563_v3, %v1977_v28 }
  0xb2   :  { %1438 = vmatpush3.bf16.msra.mxu0 %v1651_v5  ;;  %v1667_v5 = vld [vmem:[#allocation7 + $0x130] sm:$0xff]  }
  0xb3   :  { %1439 = vmatprep.subr.bf16.mxu0 %v1654_v8 }
  0xb6   :  { %1440 = vmatpush3.bf16.msra.mxu0 %v1655_v9 }
  0xb7   :  { %1441 = vmatprep.subr.bf16.mxu0 %v1658_v12 }
  0xba   :  { %1442 = vmatpush3.bf16.msra.mxu0 %v1659_v13 }
  0xbb   :  { %1516 = vmatprep.subr.bf16.mxu0 %v1837_v38 }
 0x150   :  { %v395_v32 = vpop.f32.mrb[0].mxu0  ;;  %v438_v33 = vpop.f32.mrb[0].mxu1 }
 0x151   :  { %v397_v34 = vpop.f32.mrb[1].mxu0  ;;  %v440_v35 = vpop.f32.mrb[1].mxu1 }
 0x152   :  { %v399_v39 = vpop.f32.mrb[2].mxu0  ;;  %v442_v40 = vpop.f32.mrb[2].mxu1 }
 0x153   :  { %v488_v43 = vpack.c.bf16 %v399_v39, %v395_v32  ;;  %v490_v44 = vpack.c.bf16 %v442_v40, %v438_v33  ;;  %v401_v45 = vpop.f32.mrb[3].mxu0  ;;  %v444_v46 = vpop.f32.mrb[3].mxu1 }
 0x154   :  { %v489_v47 = vpack.c.bf16 %v401_v45, %v397_v34  ;;  %v491_v48 = vpack.c.bf16 %v444_v46, %v440_v35 }
 0x155   :  { %v569_v49 = vadd.bf16 %v540_v36, %v488_v43  ;;  %v571_v50 = vadd.bf16 %v554_v37, %v490_v44  ;;  %v1023_v44 = vld [vmem:[%s2049_s4] sm:$0x1] }
 0x156   :  { %v570_v51 = vadd.bf16 %v547_v41, %v489_v47  ;;  %v572_v52 = vadd.bf16 %v561_v42, %v491_v48  ;;  %v1025_v45 = vpack.i.b16 %v1023_v44, %v1023_v44 }
 0x157   :  { %v576_v53 = vmax.bf16 %v1836_v0, %v571_v50  ;;  %v574_v57 = vmax.bf16 %v1836_v0, %v569_v49 }
 0x158   :  { %v575_v54 = vmax.bf16 %v1836_v0, %v570_v51  ;;  %v577_v55 = vmax.bf16 %v1836_v0, %v572_v52  ;;  %v1030_v51 = vrot.slane %v1025_v45, %v1977_v28 }
 0x15a   :  { %931 = vmatprep.mubr.bf16.mxu1 %v575_v54  ;;  %972 = vmatprep.mubr.bf16.mxu0 %v577_v55 }
 0x15b   :  { %932 = vmatmul.mubr.bf16.vlgmr.msra.gmra.mrb[4].mxu1 %v574_v57  ;;  %973 = vmatmul.mubr.bf16.vlgmr.msra.gmra.mrb[8].mxu0 %v576_v53  ;;  %v1684_v57 = vld [vmem:[#allocation10 + $0x38] sm:$0xff]  }
 0x15c   :  { %1497 = vmatpush3.bf16.msra.mxu1 %v1660_v56  ;;  %1512 = vmatprep.mubr.msk.bf16.mxu1 %vm1838_vm0, %v1837_v38  ;;  %v1683_v56 = vld [vmem:[#allocation10 + $0x30] sm:$0xff]  }
 0x15d   :  { %1498 = vmatprep.subr.bf16.mxu1 %v1837_v38  ;;  %1532 = vmatprep.mubr.msk.bf16.mxu0 %vm1838_vm0, %v1837_v38 }
 0x15e   :  { %1517 = vmatpush3.bf16.msra.mxu0 %v1669_v14 }
 0x15f   :  { %1518 = vmatprep.subr.bf16.mxu0 %v1837_v38 }
 0x160   :  { %1499 = vmatpush3.bf16.msra.mxu1 %v1661_v58  ;;  %v1139_v58 = vld [vmem:[%s2051_s6] sm:$0x1]  ;;  %s1840_s6 = smov [#allocation11]  }
 0x161   :  { %1500 = vmatprep.subr.bf16.mxu1 %v1837_v38  ;;  %s1276_s15 = sshll.u32 %s1840_s6, 4  ;;  %s1277_s15 = int_to_ptr.vmem [resolvable:$true] %s1276_s15 }
 0x162   :  { %1519 = vmatpush3.bf16.msra.mxu0 %v1670_v15  ;;  %s1795_s16 = scalar_lea.vmem %s1277_s15, 128  ;;  %p1800_p13 = scmp.lt.s32.totalorder %s1277_s15, %s1277_s15 }
 0x163   :  { %1520 = vmatprep.subr.bf16.mxu0 %v1837_v38  ;;  %p1796_p12 = scmp.ne.s32.totalorder %s1277_s15, %s1795_s16  ;;  %p1801_p0 = scmp.lt.s32.totalorder %s1795_s16, %s1795_s16 }
 0x164   :  { %1501 = vmatpush3.bf16.msra.mxu1 %v1662_v59  ;;  %v1141_v59 = vpack.i.b16 %v1139_v58, %v1139_v58 }
 0x165   :  { %1502 = vmatprep.subr.bf16.mxu1 %v1837_v38  ;;  %p1802_p1 = por %p1801_p0, %p1800_p13 }
 0x166   :  { %1521 = vmatpush3.bf16.msra.mxu0 %v1671_v16  ;;  %v1146_v62 = vrot.slane %v1141_v59, %v1977_v28 }
 0x167   :  { %1522 = vmatprep.subr.bf16.mxu0 %v1837_v38  ;;  %p1803_p2 = pnand %p1802_p1, %p1796_p12 }
 0x168   :  { %1503 = vmatpush3.bf16.msra.mxu1 %v1663_v61 }
 0x169   :  { %1504 = vmatprep.subr.bf16.mxu1 %v1837_v38 }
 0x16a   :  { %1523 = vmatpush3.bf16.msra.mxu0 %v1672_v17 }
 0x16b   :  { %1524 = vmatprep.subr.bf16.mxu0 %v1837_v38 }
 0x16c   :  { %1505 = vmatpush3.bf16.msra.mxu1 %v1664_v63 }
 0x16d   :  { %1506 = vmatprep.subr.bf16.mxu1 %v1837_v38 }
 0x16e   :  { %1525 = vmatpush3.bf16.msra.mxu0 %v1673_v18 }
 0x16f   :  { %1526 = vmatprep.subr.bf16.mxu0 %v1837_v38 }
 0x170   :  { %1507 = vmatpush3.bf16.msra.mxu1 %v1665_v2  ;;  %v481_v4 = vpop.f32.mrb[4].mxu0 }
 0x171   :  { %v1494_v6 = vpop.f32.mrb[5].mxu0  ;;  %1508 = vmatprep.subr.bf16.mxu1 %v1837_v38 }
 0x172   :  { %v484_v8 = vpop.f32.mrb[6].mxu0  ;;  %1527 = vmatpush3.bf16.msra.mxu0 %v1674_v19 }
 0x173   :  { %v492_v9 = vpack.c.bf16 %v484_v8, %v481_v4  ;;  %v1495_v10 = vpop.f32.mrb[7].mxu0  ;;  %1528 = vmatprep.subr.bf16.mxu0 %v1837_v38 }
 0x174   :  { %1509 = vmatpush3.bf16.msra.mxu1 %v1667_v5 }
 0x175   :  { %v573_v12 = vadd.bf16 %v568_v7, %v492_v9  ;;  %1510 = vmatprep.subr.bf16.mxu1 %v1837_v38 }
 0x176   :  { %1529 = vmatpush3.bf16.msra.mxu0 %v1675_v20 }
 0x177   :  { %v578_v13 = vmax.bf16 %v1836_v0, %v573_v12  ;;  %1530 = vmatprep.subr.bf16.mxu0 %v1837_v38 }
 0x178   :  { %1511 = vmatpush3.bf16.msra.mxu1 %v1668_v11 }
 0x179   :  { %1536 = vmatprep.subr.bf16.mxu1 %v1837_v38 }
 0x17a   :  { %1531 = vmatpush3.bf16.msra.mxu0 %v1676_v21 }
 0x17b   :  { %1513 = vmatmul.mubr.bf16.vlgmr.msra.gmra.mrb[8].mxu1 %v578_v13 }
 0x17c   :  { %1552 = vmatprep.mubr.msk.bf16.mxu1 %vm1838_vm0, %v1837_v38  ;;  %1537 = vmatpush3.bf16.msra.mxu1 %v1677_v22 }
 0x17d   :  { %1538 = vmatprep.subr.bf16.mxu1 %v1837_v38 }
 0x180   :  { %1539 = vmatpush3.bf16.msra.mxu1 %v1678_v23 }
 0x181   :  { %1540 = vmatprep.subr.bf16.mxu1 %v1837_v38 }
 0x184   :  { %1541 = vmatpush3.bf16.msra.mxu1 %v1679_v24 }
 0x185   :  { %1542 = vmatprep.subr.bf16.mxu1 %v1837_v38 }
 0x188   :  { %1543 = vmatpush3.bf16.msra.mxu1 %v1680_v25 }
 0x189   :  { %1544 = vmatprep.subr.bf16.mxu1 %v1837_v38 }
 0x18c   :  { %1545 = vmatpush3.bf16.msra.mxu1 %v1681_v26 }
 0x18d   :  { %1546 = vmatprep.subr.bf16.mxu1 %v1837_v38 }
 0x190   :  { %1547 = vmatpush3.bf16.msra.mxu1 %v1682_v27 }
 0x191   :  { %1548 = vmatprep.subr.bf16.mxu1 %v1837_v38 }
 0x194   :  { %1549 = vmatpush3.bf16.msra.mxu1 %v1683_v56 }
 0x195   :  { %1550 = vmatprep.subr.bf16.mxu1 %v1837_v38  ;;  %v1378_v38 = vld [vmem:[%s2053_s8] ss:$0 sm:$0xff] }
 0x198   :  { %1551 = vmatpush3.bf16.msra.mxu1 %v1684_v57 }
 0x22e   :  { %v1421_v29 = vpop.f32.mrb[4].mxu1  ;;  %v1443_v30 = vpop.f32.mrb[8].mxu0 }
 0x22f   :  { %v1422_v31 = vpop.f32.mrb[5].mxu1  ;;  %v1444_v32 = vpop.f32.mrb[9].mxu0 }
 0x230   :  { %v1423_v33 = vadd.f32 %v1422_v31, %v1421_v29  ;;  %v1445_v34 = vadd.f32 %v1444_v32, %v1443_v30  ;;  %v1424_v35 = vpop.f32.mrb[6].mxu1  ;;  %v1446_v36 = vpop.f32.mrb[10].mxu0 }
 0x231   :  { %v1425_v37 = vpop.f32.mrb[7].mxu1  ;;  %v1447_v39 = vpop.f32.mrb[11].mxu0 }
 0x232   :  { %v1426_v40 = vadd.f32 %v1425_v37, %v1424_v35  ;;  %v1448_v41 = vadd.f32 %v1447_v39, %v1446_v36  ;;  %v975_v42 = vadd.f32 %v1445_v34, %v1423_v33 }
 0x234   :  { %v978_v43 = vadd.f32 %v1448_v41, %v1426_v40 }
 0x24e   :  { %v1015_v46 = vpop.f32.mrb[8].mxu1 }
 0x24f   :  { %v1016_v47 = vadd.f32 %v1015_v46, %v975_v42  ;;  %v1514_v48 = vpop.f32.mrb[9].mxu1 }
 0x250   :  { %v1018_v49 = vpop.f32.mrb[10].mxu1 }
 0x251   :  { %v1019_v50 = vadd.f32 %v1018_v49, %v978_v43  ;;  %v1515_v52 = vpop.f32.mrb[11].mxu1 }
 0x253   :  { %v1022_v53 = vpack.c.bf16 %v1019_v50, %v1016_v47 }
 0x255   :  { %v1031_v54 = vadd.bf16 %v1030_v51, %v1022_v53 }
 0x257   :  { %v1032_v55 = vmax.bf16 %v1836_v0, %v1031_v54 }
 0x259   :  { %1533 = vmatmul.mubr.bf16.vlgmr.msra.gmra.mrb[12].mxu0 %v1032_v55 }
 0x32c   :  { %v1131_v60 = vpop.f32.mrb[12].mxu0 }
 0x32d   :  { %v1534_v61 = vpop.f32.mrb[13].mxu0 }
 0x32e   :  { %v1134_v63 = vpop.f32.mrb[14].mxu0 }
 0x32f   :  { %v1138_v1 = vpack.c.bf16 %v1134_v63, %v1131_v60  ;;  %v1535_v2 = vpop.f32.mrb[15].mxu0 }
 0x331   :  { %v1147_v3 = vadd.bf16 %v1146_v62, %v1138_v1 }
 0x333   :  { %v1148_v4 = vmax.bf16 %v1836_v0, %v1147_v3 }
 0x335   :  { %1553 = vmatmul.mubr.bf16.vlgmr.msra.gmra.mrb[12].mxu1 %v1148_v4 }
 0x408   :  { %v1254_v5 = vpop.f32.mrb[12].mxu1 }
 0x409   :  { %v1554_v6 = vpop.f32.mrb[13].mxu1  ;;  %v1255_v8 = vadd.f32 %v1378_v38, %v1254_v5 }
 0x40a   :  { %v1257_v7 = vpop.f32.mrb[14].mxu1 }
 0x40b   :  { %v1258_v9 = vadd.f32 %v1378_v38, %v1257_v7  ;;  %v1555_v10 = vpop.f32.mrb[15].mxu1 }
 0x40d   :  { %v1394_v28 = vpack.c.bf16 %v1258_v9, %v1255_v8 }
 0x40f   :  { %1395 = vst [vmem:[#allocation11] sm:$0xff] %v1394_v28  }
 0x410   :  { %1806 = shalt.err (!%p1803_p2)
}
 0x411   :  { %s1807_s18 = scalar_lea.hbm %s2054_s9, 128 }
 0x412   :  { %p1808_p3 = scmp.ne.s32.totalorder %s2054_s9, %s1807_s18  ;;  %p1811_p4 = scmp.lt.u32.totalorder %s1807_s18, %s2054_s9 }
 0x414   :  { %p1813_p5 = pnand %p1811_p4, %p1808_p3 }
 0x416   :  { %1816 = shalt.err (!%p1813_p5)
}
 0x417   :  { %1282 = dma.vmem_to_hbm [thread:$0]  %s1277_s15, 128, %s2054_s9, [#allocation4], %s1830_s10, %s1830_s10, %s1831_s14  }
 0x418   :  { %1823 = dma.done.wait [#allocation4], 128  }
 0x419   :  { %1824 = vsyncadd [#allocation4], 4294967168 }
 0x41a   :  { %1286 = vsyncpa [#allocation3], 1 }
 0x41b   :  { %1287 = vsyncpa [#allocation6], 1 }
 0x41c   :  { %1288 = vsyncpa [#allocation9], 1 }
 0x41d   :  { %1289 = vsyncpa [#allocation4], 1 }

</bundles_post_ra>
